<compile_context>
chip_gen: v7x
topology: tpu7x:2x2x1
jax: 0.10.0
libtpu: 0.0.40
codegen_flags: <defaults>
</compile_context>

<pallas_src>
import functools

import jax
import jax.numpy as jnp
from jax import lax
from jax.experimental import pallas as pl
from jax.experimental.pallas import tpu as pltpu


# ----------------------------------------------------------------------------
# Shared in-kernel math
# ----------------------------------------------------------------------------
def _elu(x):
    # torch.nn.ELU(alpha=1): x if x > 0 else exp(x) - 1
    return jnp.where(x > 0, x, jnp.exp(jnp.minimum(x, 0.0)) - 1.0)


def _dmp_state(w_raw, gain_raw, *, num_rbfs, weight_scale, gains_scale):
    """set_parameters + step-invariant RBF quantities: (alpha_z, c, h, w_eff)."""
    alpha_z = _elu(gain_raw) * gains_scale + 1.0                   # (B, D)
    alpha_x = alpha_z * (1.0 / 3.0)

    n = num_rbfs
    inv = 1.0 / (n - 1)                                            # linspace step
    lane = lax.broadcasted_iota(jnp.int32, w_raw.shape, 2)         # (B, D, N)
    ts = lane.astype(jnp.float32) * inv                            # temp_spacing
    c = jnp.exp(-(alpha_x[..., None] * ts))                        # RBF centers

    # h = 1/(c[i+1]-c[i])^2 with the last value repeated.  Recompute the
    # consecutive difference per lane with j = min(i, N-2): matches the
    # reference formula (the last lane naturally picks up h[N-2]) and needs no
    # cross-lane traffic.
    j = jnp.minimum(lane, n - 2)
    tsa = j.astype(jnp.float32) * inv
    tsb = (j + 1).astype(jnp.float32) * inv
    dc = jnp.exp(-(alpha_x[..., None] * tsb)) - jnp.exp(-(alpha_x[..., None] * tsa))
    h = 1.0 / (dc * dc)   # NOTE: can overflow for extreme alpha_x tails (same as reference)

    # The reference multiplies by weight_scale in set_parameters AND again in
    # _compute_forcing_fn; fold both into a single compile-time constant.
    w_eff = w_raw * (weight_scale * weight_scale)
    return alpha_z, c, h, w_eff


def _dmp_step_math(alpha_z, c, h, w_eff, y0, g, y, dy, k, *, dof, dt_over_tau):
    """compute_step: canonical phase -> forcing fn -> transformation system.

    k = -(step * dt) / tau (scalar, computed on the scalar unit by the caller).
    """
    alpha_x = alpha_z * (1.0 / 3.0)
    beta = alpha_z * 0.25
    x = jnp.exp(alpha_x * k)                                       # phase (B, D)

    d = x[..., None] - c
    at_x = jnp.exp(-(h * (d * d)))                                 # gaussian RBF (B, D, N)

    # One lane-axis reduce for numerator AND denominator (review: merge the two
    # XLU reductions): concat along the DOF (sublane) axis, reduce once, split.
    both = jnp.concatenate([w_eff * at_x, at_x], axis=1)           # (B, 2D, N)
    sums = jnp.sum(both, axis=-1)                                  # (B, 2D)
    num = sums[:, :dof]
    den = sums[:, dof:]
    forcing_fn = num / den     # exact divide (approx reciprocal broke parity)

    forcing = forcing_fn * x * (g - y0)
    ddy = alpha_z * (beta * (g - y) - dy) + forcing
    return dy + ddy * dt_over_tau


# ----------------------------------------------------------------------------
# Kernel 1: fused single-step forward  (= initialize + compute_step, one call)
# ----------------------------------------------------------------------------
def _dmp_forward_kernel(step_ref, w_ref, vecs_ref, out_ref, *, dof, num_rbfs,
                        weight_scale, gains_scale, dt, tau):
    # step_ref: SMEM (1,) int32 ; w_ref: (B, D, N) ; vecs_ref: (5, B, D) packed
    gain_raw = vecs_ref[0]
    y0, g, y, dy = vecs_ref[1], vecs_ref[2], vecs_ref[3], vecs_ref[4]
    alpha_z, c, h, w_eff = _dmp_state(
        w_ref[...], gain_raw, num_rbfs=num_rbfs,
        weight_scale=weight_scale, gains_scale=gains_scale)
    # -(step*dt)/tau on the scalar unit; dt/tau is a compile-time constant.
    k = step_ref[0].astype(jnp.float32) * (-(dt / tau))
    out = _dmp_step_math(alpha_z, c, h, w_eff, y0, g, y, dy, k,
                         dof=dof, dt_over_tau=dt / tau)
    out_ref[...] = out.astype(out_ref.dtype)


def dmp_forward(parameters, y0, g, y, dy, step, *, dof, num_rbfs,
                weight_scale, gains_scale, tau, dt):
    """DMPBase.forward: initialize(y0, parameters) + compute_step(y, dy, step)."""
    B = parameters.shape[0]
    assert num_rbfs >= 2, "num_rbfs == 0/1 path not implemented"
    assert parameters.shape[1] == dof * num_rbfs + dof, "fixed_gains=False layout"
    w_raw = parameters[:, : dof * num_rbfs].reshape(B, dof, num_rbfs)
    gain_raw = parameters[:, dof * num_rbfs:]
    vecs = jnp.stack([gain_raw, y0, g, y, dy], axis=0).astype(jnp.float32)
    step_arr = jnp.asarray(step, dtype=jnp.int32).reshape(1)

    kernel = functools.partial(
        _dmp_forward_kernel, dof=dof, num_rbfs=num_rbfs,
        weight_scale=weight_scale, gains_scale=gains_scale, dt=dt, tau=tau)
    smem = pl.BlockSpec(memory_space=pltpu.MemorySpace.SMEM)
    vmem = pl.BlockSpec(memory_space=pltpu.MemorySpace.VMEM)
    return pl.pallas_call(
        kernel,
        out_shape=jax.ShapeDtypeStruct((B, dof), jnp.float32),
        in_specs=[smem, vmem, vmem],
        out_specs=vmem,
    )(step_arr, w_raw.astype(jnp.float32), vecs)


# ----------------------------------------------------------------------------
# Kernel 2: fused rollout — `step` is a grid axis, state stays VMEM-resident
# ----------------------------------------------------------------------------
def _dmp_rollout_kernel(steps_ref, w_ref, const_ref, yd_ref, out_ref,
                        az_sc, c_sc, h_sc, w_sc, *, dof, num_rbfs,
                        weight_scale, gains_scale, dt, tau):
    t = pl.program_id(0)

    @pl.when(t == 0)   # parameter-dependent state computed once, kept in scratch
    def _():
        alpha_z, c, h, w_eff = _dmp_state(
            w_ref[...], const_ref[0], num_rbfs=num_rbfs,
            weight_scale=weight_scale, gains_scale=gains_scale)
        az_sc[...] = alpha_z
        c_sc[...] = c
        h_sc[...] = h
        w_sc[...] = w_eff

    k = steps_ref[t].astype(jnp.float32) * (-(dt / tau))
    y0, g = const_ref[1], const_ref[2]
    y, dy = yd_ref[0, 0], yd_ref[0, 1]
    out = _dmp_step_math(az_sc[...], c_sc[...], h_sc[...], w_sc[...],
                         y0, g, y, dy, k, dof=dof, dt_over_tau=dt / tau)
    out_ref[0] = out.astype(out_ref.dtype)


def dmp_rollout(parameters, y0, g, ys, dys, steps, *, dof, num_rbfs,
                weight_scale, gains_scale, tau, dt):
    """Fused multi-step path: one pallas_call, grid over steps, init at t==0.

    ys/dys are the externally observed robot states per step, shape (T, B, D).
    TODO(synk): the robot-state update itself lives outside DMPBase, so it is
    not fused here (only the controller math is).
    """
    B = parameters.shape[0]
    T = steps.shape[0]
    assert num_rbfs >= 2 and parameters.shape[1] == dof * num_rbfs + dof
    w_raw = parameters[:, : dof * num_rbfs].reshape(B, dof, num_rbfs)
    gain_raw = parameters[:, dof * num_rbfs:]
    consts = jnp.stack([gain_raw, y0, g], axis=0).astype(jnp.float32)   # (3, B, D)
    yd = jnp.stack([ys, dys], axis=1).astype(jnp.float32)               # (T, 2, B, D)

    kernel = functools.partial(
        _dmp_rollout_kernel, dof=dof, num_rbfs=num_rbfs,
        weight_scale=weight_scale, gains_scale=gains_scale, dt=dt, tau=tau)
    grid_spec = pltpu.PrefetchScalarGridSpec(
        num_scalar_prefetch=1,               # steps -> SMEM, read per grid point
        grid=(T,),
        in_specs=[
            pl.BlockSpec((B, dof, num_rbfs), lambda t, s: (0, 0, 0)),    # weights
            pl.BlockSpec((3, B, dof), lambda t, s: (0, 0, 0)),           # consts
            pl.BlockSpec((1, 2, B, dof), lambda t, s: (t, 0, 0, 0)),     # per-step y,dy
        ],
        out_specs=pl.BlockSpec((1, B, dof), lambda t, s: (t, 0, 0)),
        scratch_shapes=[
            pltpu.VMEM((B, dof), jnp.float32),                # alpha_z
            pltpu.VMEM((B, dof, num_rbfs), jnp.float32),      # c
            pltpu.VMEM((B, dof, num_rbfs), jnp.float32),      # h
            pltpu.VMEM((B, dof, num_rbfs), jnp.float32),      # w_eff
        ],
    )
    return pl.pallas_call(
        kernel,
        out_shape=jax.ShapeDtypeStruct((T, B, dof), jnp.float32),
        grid_spec=grid_spec,
        compiler_params=pltpu.CompilerParams(dimension_semantics=("arbitrary",)),
    )(steps.astype(jnp.int32), w_raw.astype(jnp.float32), consts, yd)


# ----------------------------------------------------------------------------
# Pure-JAX reference mirroring the PyTorch module (for verification)
# ----------------------------------------------------------------------------
def dmp_forward_ref(parameters, y0, g, y, dy, step, *, dof, num_rbfs,
                    weight_scale, gains_scale, tau, dt):
    B = parameters.shape[0]
    w_raw = parameters[:, : dof * num_rbfs].reshape(B, dof, num_rbfs)
    gain_raw = parameters[:, dof * num_rbfs:]
    elu = jnp.where(gain_raw > 0, gain_raw,
                    jnp.exp(jnp.minimum(gain_raw, 0.0)) - 1.0)
    alpha_z = elu * gains_scale + 1.0
    alpha_x = alpha_z / 3.0
    beta = alpha_z / 4.0
    w_forcing = w_raw * weight_scale
    ts = jnp.arange(num_rbfs, dtype=jnp.float32) * (1.0 / (num_rbfs - 1))
    c = jnp.exp(-alpha_x[..., None] * ts[None, None, :])
    h = 1.0 / (c[..., 1:] - c[..., :-1]) ** 2
    h = jnp.concatenate((h, h[..., -1:]), axis=-1)
    x = jnp.exp(-alpha_x * ((step * dt) / tau))
    at_x = jnp.exp(-h * (x[..., None] - c) ** 2)
    fraction = jnp.einsum('bdn,bdn->bd', w_forcing * weight_scale, at_x)
    forcing_fn = fraction / at_x.sum(-1)
    forcing = forcing_fn * x * (g - y0)
    ddy = alpha_z * (beta * (g - y) - dy) + forcing
    return dy + ddy * (dt / tau)


if __name__ == "__main__":
    # Module hyper-params (params dict / kwargs of __init__)
    num_seqs = 2          # B
    dof = 8               # D (actions_num)
    num_rbfs = 16         # N
    weight_scale = 1.5
    gains_scale = 25.0
    dt = 0.01
    max_steps = 100
    tau_scale = 1.0
    tau = max_steps * dt * tau_scale       # 1.0
    num_params = dof * num_rbfs + dof      # fixed_gains = False

    key = jax.random.PRNGKey(0)
    k1, k2, k3, k4, k5 = jax.random.split(key, 5)
    parameters = 0.1 * jax.random.normal(k1, (num_seqs, num_params), jnp.float32)
    y0 = jax.random.normal(k2, (num_seqs, dof), jnp.float32)
    g = jax.random.normal(k3, (num_seqs, dof), jnp.float32)        # goal buffer
    y = y0 + 0.1 * jax.random.normal(k4, (num_seqs, dof), jnp.float32)
    dy = 0.1 * jax.random.normal(k5, (num_seqs, dof), jnp.float32)

    cfg = dict(dof=dof, num_rbfs=num_rbfs, weight_scale=weight_scale,
               gains_scale=gains_scale, tau=tau, dt=dt)

    # 1) Module forward: ONE fused pallas_call (initialize + compute_step), jitted.
    fwd = jax.jit(functools.partial(dmp_forward, **cfg))
    step = 5
    out = jax.block_until_ready(fwd(parameters, y0, g, y, dy, step))
    ref = dmp_forward_ref(parameters, y0, g, y, dy, step, **cfg)
    assert jnp.allclose(out, ref, rtol=1e-4, atol=2e-6), (out, ref)

    # 2) Fused rollout: `step` is a grid axis of a single pallas_call; the
    #    parameter-dependent state is computed once and stays VMEM-resident.
    #    Robot states per step are supplied externally (held fixed for the test).
    steps = jnp.array([0, 5, 50, 99], dtype=jnp.int32)
    T = int(steps.shape[0])
    ys = jnp.broadcast_to(y, (T,) + y.shape)
    dys = jnp.broadcast_to(dy, (T,) + dy.shape)
    roll = jax.jit(functools.partial(dmp_rollout, **cfg))
    outs = jax.block_until_ready(roll(parameters, y0, g, ys, dys, steps))
    for i in range(T):
        r = dmp_forward_ref(parameters, y0, g, y, dy, int(steps[i]), **cfg)
        assert jnp.allclose(outs[i], r, rtol=1e-4, atol=2e-6), (i, outs[i], r)

    print("KERNEL_OK")
</pallas_src>

<mosaic_0001>
module attributes {stable_mosaic.version = 11 : i64} {
  func.func @_dmp_forward_kernel(%arg0: memref<1xi32, #tpu.memory_space<smem>>, %arg1: memref<2x8x16xf32, #tpu.memory_space<vmem>>, %arg2: memref<5x2x8xf32, #tpu.memory_space<vmem>>, %arg3: memref<2x8xf32, #tpu.memory_space<vmem>>) attributes {dimension_semantics = [], scalar_prefetch = 0 : i64, scratch_operands = 0 : i64, tpu.core_type = #tpu.core_type<tc>} {
    %c0 = arith.constant 0 : index
    %c0_0 = arith.constant 0 : index
    %c0_1 = arith.constant 0 : index
    %0 = vector.load %arg2[%c0, %c0_0, %c0_1] : memref<5x2x8xf32, #tpu.memory_space<vmem>>, vector<1x2x8xf32>
    %1 = vector.shape_cast %0 : vector<1x2x8xf32> to vector<2x8xf32>
    %c1 = arith.constant 1 : index
    %c0_2 = arith.constant 0 : index
    %c0_3 = arith.constant 0 : index
    %2 = vector.load %arg2[%c1, %c0_2, %c0_3] : memref<5x2x8xf32, #tpu.memory_space<vmem>>, vector<1x2x8xf32>
    %3 = vector.shape_cast %2 : vector<1x2x8xf32> to vector<2x8xf32>
    %c2 = arith.constant 2 : index
    %c0_4 = arith.constant 0 : index
    %c0_5 = arith.constant 0 : index
    %4 = vector.load %arg2[%c2, %c0_4, %c0_5] : memref<5x2x8xf32, #tpu.memory_space<vmem>>, vector<1x2x8xf32>
    %5 = vector.shape_cast %4 : vector<1x2x8xf32> to vector<2x8xf32>
    %c3 = arith.constant 3 : index
    %c0_6 = arith.constant 0 : index
    %c0_7 = arith.constant 0 : index
    %6 = vector.load %arg2[%c3, %c0_6, %c0_7] : memref<5x2x8xf32, #tpu.memory_space<vmem>>, vector<1x2x8xf32>
    %7 = vector.shape_cast %6 : vector<1x2x8xf32> to vector<2x8xf32>
    %c4 = arith.constant 4 : index
    %c0_8 = arith.constant 0 : index
    %c0_9 = arith.constant 0 : index
    %8 = vector.load %arg2[%c4, %c0_8, %c0_9] : memref<5x2x8xf32, #tpu.memory_space<vmem>>, vector<1x2x8xf32>
    %9 = vector.shape_cast %8 : vector<1x2x8xf32> to vector<2x8xf32>
    %c0_10 = arith.constant 0 : index
    %c0_11 = arith.constant 0 : index
    %c0_12 = arith.constant 0 : index
    %10 = vector.load %arg1[%c0_10, %c0_11, %c0_12] : memref<2x8x16xf32, #tpu.memory_space<vmem>>, vector<2x8x16xf32>
    %cst = arith.constant 0.000000e+00 : f32
    %11 = vector.broadcast %cst : f32 to vector<2x8xf32>
    %12 = arith.cmpf ogt, %1, %11 : vector<2x8xf32>
    %cst_13 = arith.constant 0.000000e+00 : f32
    %13 = vector.broadcast %cst_13 : f32 to vector<2x8xf32>
    %14 = arith.minimumf %1, %13 : vector<2x8xf32>
    %15 = math.exp %14 : vector<2x8xf32>
    %cst_14 = arith.constant 1.000000e+00 : f32
    %16 = vector.broadcast %cst_14 : f32 to vector<2x8xf32>
    %17 = arith.subf %15, %16 : vector<2x8xf32>
    %18 = arith.select %12, %1, %17 : vector<2x8xi1>, vector<2x8xf32>
    %cst_15 = arith.constant 2.500000e+01 : f32
    %19 = vector.broadcast %cst_15 : f32 to vector<2x8xf32>
    %20 = arith.mulf %18, %19 : vector<2x8xf32>
    %cst_16 = arith.constant 1.000000e+00 : f32
    %21 = vector.broadcast %cst_16 : f32 to vector<2x8xf32>
    %22 = arith.addf %20, %21 : vector<2x8xf32>
    %cst_17 = arith.constant 0.333333343 : f32
    %23 = vector.broadcast %cst_17 : f32 to vector<2x8xf32>
    %24 = arith.mulf %22, %23 : vector<2x8xf32>
    %25 = tpu.iota {dimensions = array<i32: 2>} : vector<2x8x16xi32>
    %26 = arith.sitofp %25 : vector<2x8x16xi32> to vector<2x8x16xf32>
    %cst_18 = arith.constant 0.0666666701 : f32
    %27 = vector.broadcast %cst_18 : f32 to vector<2x8x16xf32>
    %28 = arith.mulf %26, %27 : vector<2x8x16xf32>
    %29 = vector.shape_cast %24 : vector<2x8xf32> to vector<2x8x1xf32>
    %30 = vector.broadcast %29 : vector<2x8x1xf32> to vector<2x8x16xf32>
    %31 = arith.mulf %30, %28 : vector<2x8x16xf32>
    %cst_19 = arith.constant 0.000000e+00 : f32
    %32 = vector.broadcast %cst_19 : f32 to vector<2x8x16xf32>
    %33 = arith.subf %32, %31 : vector<2x8x16xf32>
    %34 = math.exp %33 : vector<2x8x16xf32>
    %c14_i32 = arith.constant 14 : i32
    %35 = vector.broadcast %c14_i32 : i32 to vector<2x8x16xi32>
    %36 = arith.minsi %25, %35 : vector<2x8x16xi32>
    %37 = arith.sitofp %36 : vector<2x8x16xi32> to vector<2x8x16xf32>
    %cst_20 = arith.constant 0.0666666701 : f32
    %38 = vector.broadcast %cst_20 : f32 to vector<2x8x16xf32>
    %39 = arith.mulf %37, %38 : vector<2x8x16xf32>
    %c1_i32 = arith.constant 1 : i32
    %40 = vector.broadcast %c1_i32 : i32 to vector<2x8x16xi32>
    %41 = arith.addi %36, %40 : vector<2x8x16xi32>
    %42 = arith.sitofp %41 : vector<2x8x16xi32> to vector<2x8x16xf32>
    %cst_21 = arith.constant 0.0666666701 : f32
    %43 = vector.broadcast %cst_21 : f32 to vector<2x8x16xf32>
    %44 = arith.mulf %42, %43 : vector<2x8x16xf32>
    %45 = vector.shape_cast %24 : vector<2x8xf32> to vector<2x8x1xf32>
    %46 = vector.broadcast %45 : vector<2x8x1xf32> to vector<2x8x16xf32>
    %47 = arith.mulf %46, %44 : vector<2x8x16xf32>
    %cst_22 = arith.constant 0.000000e+00 : f32
    %48 = vector.broadcast %cst_22 : f32 to vector<2x8x16xf32>
    %49 = arith.subf %48, %47 : vector<2x8x16xf32>
    %50 = math.exp %49 : vector<2x8x16xf32>
    %51 = vector.shape_cast %24 : vector<2x8xf32> to vector<2x8x1xf32>
    %52 = vector.broadcast %51 : vector<2x8x1xf32> to vector<2x8x16xf32>
    %53 = arith.mulf %52, %39 : vector<2x8x16xf32>
    %cst_23 = arith.constant 0.000000e+00 : f32
    %54 = vector.broadcast %cst_23 : f32 to vector<2x8x16xf32>
    %55 = arith.subf %54, %53 : vector<2x8x16xf32>
    %56 = math.exp %55 : vector<2x8x16xf32>
    %57 = arith.subf %50, %56 : vector<2x8x16xf32>
    %58 = arith.mulf %57, %57 : vector<2x8x16xf32>
    %cst_24 = arith.constant 1.000000e+00 : f32
    %59 = vector.broadcast %cst_24 : f32 to vector<2x8x16xf32>
    %60 = arith.divf %59, %58 : vector<2x8x16xf32>
    %cst_25 = arith.constant 2.250000e+00 : f32
    %61 = vector.broadcast %cst_25 : f32 to vector<2x8x16xf32>
    %62 = arith.mulf %10, %61 : vector<2x8x16xf32>
    %c0_26 = arith.constant 0 : index
    %63 = memref.load %arg0[%c0_26] : memref<1xi32, #tpu.memory_space<smem>>
    %64 = arith.sitofp %63 : i32 to f32
    %cst_27 = arith.constant -0.00999999977 : f32
    %65 = arith.mulf %64, %cst_27 : f32
    %cst_28 = arith.constant 0.333333343 : f32
    %66 = vector.broadcast %cst_28 : f32 to vector<2x8xf32>
    %67 = arith.mulf %22, %66 : vector<2x8xf32>
    %cst_29 = arith.constant 2.500000e-01 : f32
    %68 = vector.broadcast %cst_29 : f32 to vector<2x8xf32>
    %69 = arith.mulf %22, %68 : vector<2x8xf32>
    %70 = vector.broadcast %65 : f32 to vector<2x8xf32>
    %71 = arith.mulf %67, %70 : vector<2x8xf32>
    %72 = math.exp %71 : vector<2x8xf32>
    %73 = vector.shape_cast %72 : vector<2x8xf32> to vector<2x8x1xf32>
    %74 = vector.broadcast %73 : vector<2x8x1xf32> to vector<2x8x16xf32>
    %75 = arith.subf %74, %34 : vector<2x8x16xf32>
    %76 = arith.mulf %75, %75 : vector<2x8x16xf32>
    %77 = arith.mulf %60, %76 : vector<2x8x16xf32>
    %cst_30 = arith.constant 0.000000e+00 : f32
    %78 = vector.broadcast %cst_30 : f32 to vector<2x8x16xf32>
    %79 = arith.subf %78, %77 : vector<2x8x16xf32>
    %80 = math.exp %79 : vector<2x8x16xf32>
    %81 = arith.mulf %62, %80 : vector<2x8x16xf32>
    %82 = tpu.concatenate %81, %80 in 1 : vector<2x8x16xf32>, vector<2x8x16xf32> -> vector<2x16x16xf32>
    %cst_31 = arith.constant dense<0.000000e+00> : vector<2x16xf32>
    %83 = vector.multi_reduction <add>, %82, %cst_31 [2] : vector<2x16x16xf32> to vector<2x16xf32>
    %84 = vector.extract_strided_slice %83 {offsets = [0, 0], sizes = [2, 8], strides = [1, 1]} : vector<2x16xf32> to vector<2x8xf32>
    %85 = vector.extract_strided_slice %83 {offsets = [0, 8], sizes = [2, 8], strides = [1, 1]} : vector<2x16xf32> to vector<2x8xf32>
    %86 = arith.divf %84, %85 : vector<2x8xf32>
    %87 = arith.mulf %86, %72 : vector<2x8xf32>
    %88 = arith.subf %5, %3 : vector<2x8xf32>
    %89 = arith.mulf %87, %88 : vector<2x8xf32>
    %90 = arith.subf %5, %7 : vector<2x8xf32>
    %91 = arith.mulf %69, %90 : vector<2x8xf32>
    %92 = arith.subf %91, %9 : vector<2x8xf32>
    %93 = arith.mulf %22, %92 : vector<2x8xf32>
    %94 = arith.addf %93, %89 : vector<2x8xf32>
    %cst_32 = arith.constant 0.00999999977 : f32
    %95 = vector.broadcast %cst_32 : f32 to vector<2x8xf32>
    %96 = arith.mulf %94, %95 : vector<2x8xf32>
    %97 = arith.addf %9, %96 : vector<2x8xf32>
    %c0_33 = arith.constant 0 : index
    %c0_34 = arith.constant 0 : index
    %98 = vector.load %arg3[%c0_33, %c0_34] : memref<2x8xf32, #tpu.memory_space<vmem>>, vector<2x8xf32>
    tpu.vector_store %arg3[%c0_33, %c0_34], %97 {strides = array<i32>} : memref<2x8xf32, #tpu.memory_space<vmem>>, vector<2x8xf32>,
    return
  }
}

</mosaic_0001>

<bundles_post_ra>
// kernel: dmp_forward.1
= control target key start
LH: loop header
LB: loop body
LE: loop exit
PB: predicated region body
PF: predicated region fallthrough
CT: control target
= control target key end

     0   :  { %s378_s0 = inlined_call_operand.<no memory space> [shape: s32[1], index: 0, kind: input, shape index: {}]   ;;  %s379_s1 = inlined_call_operand.vmem [shape: f32[2,8,16], index: 1, kind: input, shape index: {}]   ;;  %s380_s2 = inlined_call_operand.vmem [shape: f32[5,2,8], index: 2, kind: input, shape index: {}]   ;;  %s381_s3 = inlined_call_operand.hbm [shape: f32[2,8], index: 3, kind: output, shape index: {}]  }
   0x1   :  { %v16_v0 = vld [vmem:[%s380_s2] sm:$0x3] }
   0x2   :  { %9 = vsyncpa [#allocation4], 0  ;;  %v28_v1 = vmin.f32 %v16_v0, 0.0  ;;  %v36_v3 = vlaneseq  ;;  %s96_s16 = scvt.s32.f32 %s378_s0  ;;  %vm27_vm0 = vcmp.gt.f32.partialorder %v16_v0, 0.0  ;;  %vm131_vm2 = vcmask 130048   ;;  %s291_s28 = smov [#allocation3]  }
   0x3   :  { %vm207_vm3 = vcmask 1041409   ;;  %s221_s29 = sshll.u32 %s291_s28, 4  ;;  %vm213_vm4 = vcmask 58368   ;;  %s222_s29 = int_to_ptr.vmem [resolvable:$true] %s221_s29 }
   0x4   :  { %v29_v2 = vmul.f32 1.442695, %v28_v1  ;;  %v318_v6 = vshrl.u32 %v36_v3, 7  ;;  %s97_s17 = smul.f32 -0.01, %s96_s16  ;;  %v336_v21 = vand.u32 127, %v36_v3  ;;  %p271_p1 = scmp.lt.s32.totalorder %s222_s29, %s222_s29 }
   0x6   :  { %238 = vpow2.f32 %v29_v2  ;;  %v323_v10 = vsub.s32 0, %v318_v6  ;;  %v99_v11 = vstv %s97_s17  ;;  %v327_v13 = vsub.s32 1, %v318_v6 }
   0x7   :  { %vm62_vm1 = vcmp.lt.s32.totalorder %v336_v21, 14  ;;  %v38_v26 = vcvt.s32.f32 %v336_v21 }
   0x8   :  { %v63_v22 = vsel %vm62_vm1, %v336_v21, 14 }
   0x9   :  { %v66_v23 = vadd.s32 1, %v63_v22  ;;  %v64_v24 = vcvt.s32.f32 %v63_v22  ;;  %v39_v29 = vmul.f32 0.06666667, %v38_v26 }
   0xb   :  { %v67_v25 = vcvt.s32.f32 %v66_v23  ;;  %v65_v27 = vmul.f32 0.06666667, %v64_v24 }
   0xd   :  { %v68_v28 = vmul.f32 0.06666667, %v67_v25 }
  0x10   :  { %v239_v4 = vpop.eup %238 }
  0x11   :  { %v233_v5 = vadd.f32 -1.0, %v239_v4 }
  0x13   :  { %v32_v7 = vsel %vm27_vm0, %v16_v0, %v233_v5 }
  0x14   :  { %v33_v8 = vmul.f32 25.0, %v32_v7 }
  0x16   :  { %v320_v9 = vadd.f32 1.0, %v33_v8 }
  0x18   :  { %v35_v12 = vmul.f32 0.33333334, %v320_v9 }
  0x1a   :  { %v43_v14 = vrot.slane %v35_v12, %v323_v10  ;;  %v100_v15 = vmul.f32 %v99_v11, %v35_v12  ;;  %v50_v17 = vrot.slane %v35_v12, %v327_v13 }
  0x1c   :  { %v101_v16 = vmul.f32 1.442695, %v100_v15  ;;  %45 = vbcast.lane.b32.xlu0 %v43_v14, 256  ;;  %v25_v14 = vld [vmem:[%s379_s1] sm:$0xff] }
  0x1d   :  { %v93_v15 = vmul.f32 2.25, %v25_v14 }
  0x1e   :  { %240 = vpow2.f32 %v101_v16  ;;  %v26_v16 = vld [vmem:[%s379_s1 + $0x8] sm:$0xff] }
  0x1f   :  { %v94_v22 = vmul.f32 2.25, %v26_v16 }
  0x20   :  { %52 = vbcast.lane.b32.xlu0 %v50_v17, 256 }
  0x28   :  { %v241_v18 = vpop.eup %240 }
  0x29   :  { %v106_v19 = vrot.slane %v241_v18, %v323_v10  ;;  %v333_v20 = vrot.slane %v241_v18, %v327_v13 }
  0x2b   :  { %108 = vbcast.lane.b32.xlu1 %v106_v19, 256 }
  0x2f   :  { %115 = vbcast.lane.b32.xlu1 %v333_v20, 256 }
  0x33   :  { %154 = vbcast.lane.b32.xlu1 %v106_v19, 256 }
  0x8e   :  { %v46_v30 = vpop.permute.xlu0 %45 }
  0x8f   :  { %v69_v31 = vmul.f32 %v68_v28, %v46_v30  ;;  %v77_v32 = vmul.f32 %v65_v27, %v46_v30  ;;  %v54_v33 = vmul.f32 %v46_v30, %v39_v29 }
  0x91   :  { %v71_v34 = vsub.f32 0.0, %v69_v31  ;;  %v79_v35 = vsub.f32 0.0, %v77_v32  ;;  %v56_v41 = vsub.f32 0.0, %v54_v33  ;;  %v290_v33 = vmov 0  }
  0x92   :  { %v53_v36 = vpop.permute.xlu0 %52  ;;  %237 = vset.pattern.permute.xlu1 %v290_v33  ;;  %236 = vset.pattern.permute.xlu0 %v290_v33 }
  0x93   :  { %v73_v37 = vmul.f32 1.442695, %v71_v34  ;;  %v81_v38 = vmul.f32 1.442695, %v79_v35  ;;  %v70_v39 = vmul.f32 %v68_v28, %v53_v36  ;;  %v78_v40 = vmul.f32 %v65_v27, %v53_v36  ;;  %v229_v28 = vld [vmem:[%s380_s2 + $0x2] sm:$0x3] }
  0x94   :  { %v55_v42 = vmul.f32 %v53_v36, %v39_v29  ;;  %v58_v47 = vmul.f32 1.442695, %v56_v41  ;;  %v230_v29 = vld [vmem:[%s380_s2 + $0x4] sm:$0x3] }
  0x95   :  { %242 = vpow2.f32 %v73_v37  ;;  %v72_v43 = vsub.f32 0.0, %v70_v39  ;;  %v80_v44 = vsub.f32 0.0, %v78_v40  ;;  %v167_v30 = vsub.f32 %v230_v29, %v229_v28 }
  0x96   :  { %244 = vpow2.f32 %v81_v38  ;;  %v57_v48 = vsub.f32 0.0, %v55_v42 }
  0x97   :  { %v75_v45 = vmul.f32 1.442695, %v72_v43  ;;  %v83_v46 = vmul.f32 1.442695, %v80_v44  ;;  %v172_v31 = vrot.slane %v167_v30, %v323_v10  ;;  %v179_v32 = vrot.slane %v167_v30, %v327_v13 }
  0x98   :  { %v60_v49 = vmul.f32 1.442695, %v57_v48  ;;  %v98_v48 = vmul.f32 0.25, %v320_v9 }
  0x99   :  { %246 = vpow2.f32 %v75_v45 }
  0x9a   :  { %248 = vpow2.f32 %v83_v46 }
  0x9b   :  { %250 = vpow2.f32 %v58_v47  ;;  %v231_v47 = vld [vmem:[%s380_s2 + $0x6] sm:$0x3] }
  0x9c   :  { %252 = vpow2.f32 %v60_v49  ;;  %v187_v49 = vsub.f32 %v230_v29, %v231_v47 }
  0x9d   :  { %v109_v56 = vpop.permute.xlu1 %108 }
  0x9f   :  { %v243_v50 = vpop.eup %242 }
  0xa0   :  { %v245_v51 = vpop.eup %244 }
  0xa1   :  { %v85_v52 = vsub.f32 %v243_v50, %v245_v51  ;;  %v116_v62 = vpop.permute.xlu1 %115  ;;  %v188_v50 = vmul.f32 %v187_v49, %v98_v48  ;;  %v232_v51 = vld [vmem:[%s380_s2 + $0x8] sm:$0x3]  ;;  %s266_s2 = scalar_lea.vmem %s222_s29, 32 }
  0xa2   :  { %p267_p0 = scmp.ne.s32.totalorder %s222_s29, %s266_s2  ;;  %p272_p2 = scmp.lt.s32.totalorder %s266_s2, %s266_s2 }
  0xa3   :  { %v247_v53 = vpop.eup %246  ;;  %v87_v54 = vmul.f32 %v85_v52, %v85_v52  ;;  %v189_v52 = vsub.f32 %v188_v50, %v232_v51 }
  0xa4   :  { %v249_v55 = vpop.eup %248  ;;  %p273_p3 = por %p272_p2, %p271_p1 }
  0xa5   :  { %254 = vrcp.f32 %v87_v54  ;;  %v86_v57 = vsub.f32 %v247_v53, %v249_v55  ;;  %v251_v58 = vpop.eup %250  ;;  %v155_v34 = vpop.permute.xlu1 %154  ;;  %v201_v53 = vsub.s32 %v336_v21, %v318_v6 }
  0xa6   :  { %v117_v60 = vsub.f32 %v109_v56, %v251_v58  ;;  %v253_v61 = vpop.eup %252  ;;  %v190_v56 = vmul.f32 %v189_v52, %v320_v9  ;;  %p274_p4 = pnand %p273_p3, %p267_p0 }
  0xa7   :  { %v88_v59 = vmul.f32 %v86_v57, %v86_v57  ;;  %v118_v0 = vsub.f32 %v116_v62, %v253_v61 }
  0xa8   :  { %v119_v63 = vmul.f32 %v117_v60, %v117_v60 }
  0xa9   :  { %256 = vrcp.f32 %v88_v59  ;;  %v120_v4 = vmul.f32 %v118_v0, %v118_v0 }
  0xaf   :  { %v255_v1 = vpop.eup %254 }
  0xb0   :  { %v121_v2 = vmul.f32 %v255_v1, %v119_v63 }
  0xb2   :  { %v123_v3 = vsub.f32 0.0, %v121_v2 }
  0xb3   :  { %v257_v5 = vpop.eup %256 }
  0xb4   :  { %v125_v7 = vmul.f32 1.442695, %v123_v3  ;;  %v122_v8 = vmul.f32 %v257_v5, %v120_v4 }
  0xb6   :  { %258 = vpow2.f32 %v125_v7  ;;  %v124_v11 = vsub.f32 0.0, %v122_v8 }
  0xb8   :  { %v127_v12 = vmul.f32 1.442695, %v124_v11 }
  0xba   :  { %260 = vpow2.f32 %v127_v12 }
  0xc0   :  { %v259_v17 = vpop.eup %258 }
  0xc1   :  { %v135_v18 = vsel %vm131_vm2, %v259_v17, 0.0  ;;  %v129_v19 = vmul.f32 %v259_v17, %v93_v15 }
  0xc2   :  { %136 = vadd.xlane.f32.xlu0 %v135_v18 }
  0xc3   :  { %v132_v24 = vsel %vm131_vm2, %v129_v19, 0.0 }
  0xc4   :  { %v261_v23 = vpop.eup %260 }
  0xc5   :  { %v141_v25 = vsel %vm131_vm2, %v261_v23, 0.0  ;;  %v130_v26 = vmul.f32 %v261_v23, %v94_v22 }
  0xc6   :  { %133 = vadd.xlane.f32.xlu0 %v132_v24  ;;  %142 = vadd.xlane.f32.xlu1 %v141_v25 }
  0xc7   :  { %v138_v27 = vsel %vm131_vm2, %v130_v26, 0.0 }
  0xca   :  { %139 = vadd.xlane.f32.xlu0 %v138_v27 }
  0xd7   :  { %174 = vbcast.lane.b32.xlu1 %v172_v31, 256 }
  0xdb   :  { %181 = vbcast.lane.b32.xlu1 %v179_v32, 256 }
  0xe0   :  { %161 = vbcast.lane.b32.xlu0 %v333_v20, 256 }
 0x14f   :  { %v137_v35 = vpop.xlane.xlu0 %136 }
 0x150   :  { %262 = vrcp.f32 %v137_v35 }
 0x153   :  { %v143_v36 = vpop.xlane.xlu1 %142  ;;  %v134_v37 = vpop.xlane.xlu0 %133 }
 0x154   :  { %264 = vrcp.f32 %v143_v36 }
 0x157   :  { %v140_v39 = vpop.xlane.xlu0 %139  ;;  %v175_v40 = vpop.permute.xlu1 %174 }
 0x15a   :  { %v263_v38 = vpop.eup %262 }
 0x15b   :  { %v145_v41 = vmul.f32 %v263_v38, %v134_v37  ;;  %v162_v43 = vpop.permute.xlu0 %161  ;;  %v182_v45 = vpop.permute.xlu1 %181 }
 0x15d   :  { %v165_v10 = vmul.f32 %v155_v34, %v145_v41 }
 0x15e   :  { %v265_v42 = vpop.eup %264 }
 0x15f   :  { %v147_v13 = vmul.f32 %v265_v42, %v140_v39  ;;  %v185_v44 = vmul.f32 %v175_v40, %v165_v10 }
 0x161   :  { %v166_v20 = vmul.f32 %v162_v43, %v147_v13  ;;  %194 = vperm.xlu0 %236, %v185_v44  }
 0x163   :  { %v186_v46 = vmul.f32 %v182_v45, %v166_v20 }
 0x165   :  { %197 = vperm.xlu1 %237, %v186_v46  }
 0x1e0   :  { %v195_v54 = vpop.permute.xlu0 %194 }
 0x1e1   :  { %v202_v57 = vrot.slane %v195_v54, %v201_v53 }
 0x1e4   :  { %v198_v55 = vpop.permute.xlu1 %197 }
 0x1e5   :  { %v206_v58 = vrot.slane %v198_v55, %v201_v53 }
 0x1e7   :  { %v208_v59 = vsel %vm207_vm3, %v206_v58, %v202_v57 }
 0x1e8   :  { %v210_v60 = vadd.f32 %v208_v59, %v190_v56 }
 0x1ea   :  { %v211_v61 = vmul.f32 0.01, %v210_v60 }
 0x1ec   :  { %v212_v62 = vadd.f32 %v232_v51, %v211_v61 }
 0x1ee   :  { %214 = vst.msk [vmem:[#allocation3] sm:$0x3] %vm213_vm4, %v212_v62 }
 0x1ef   :  { %277 = shalt.err (!%p274_p4)
}
 0x1f0   :  { %s278_s5 = scalar_lea.hbm %s381_s3, 32 }
 0x1f1   :  { %p279_p5 = scmp.ne.s32.totalorder %s381_s3, %s278_s5  ;;  %p282_p6 = scmp.lt.u32.totalorder %s278_s5, %s381_s3 }
 0x1f3   :  { %p284_p7 = pnand %p282_p6, %p279_p5 }
 0x1f5   :  { %287 = shalt.err (!%p284_p7)
}
 0x1f6   :  { %224 = dma.vmem_to_hbm [thread:$0]  %s222_s29, 32, %s381_s3, [#allocation4]  }
 0x1f7   :  { %288 = dma.done.wait [#allocation4], 32  }
 0x1f8   :  { %289 = vsyncadd [#allocation4], 4294967264 }
 0x1f9   :  { %228 = vsyncpa [#allocation4], 1 }

</bundles_post_ra>
